<compile_context>
chip_gen: v7x
topology: tpu7x:2x2x1
jax: 0.10.0
libtpu: 0.0.40
codegen_flags: <defaults>
</compile_context>

<pallas_src>
import functools

import jax
import jax.numpy as jnp
from jax.experimental import pallas as pl
from jax.experimental.pallas import tpu as pltpu


def _round_up(x, m):
    return -(-x // m) * m


def _vmem_capacity_bytes():
    """Physical VMEM per core; conservative 64 MiB (v7x) fallback."""
    try:
        info = pltpu.get_tpu_info()
        cap = getattr(info, "vmem_capacity_bytes", None)
        if cap:
            return int(cap)
    except Exception:
        pass
    return 64 * 1024 * 1024


def _lane_partial_sum(x):
    """(rows, cols) -> (rows, 128) sum of lane-aligned 128-wide chunks.

    cols must be a multiple of 128.  Static lane-aligned slices + a pairwise
    add tree: pure vreg-to-vreg VPU adds (no XLU); the single cross-lane
    reduction happens exactly once, in the epilogue.
    """
    cols = x.shape[1]
    chunks = [x[:, c * 128:(c + 1) * 128] for c in range(cols // 128)]
    while len(chunks) > 1:
        nxt = [chunks[i] + chunks[i + 1] for i in range(0, len(chunks) - 1, 2)]
        if len(chunks) % 2:
            nxt.append(chunks[-1])
        chunks = nxt
    return chunks[0]


def _dice_single_kernel(pred_ref, tgt_ref, loss_ref, *, loss_type, eps, scale):
    """Whole problem resident in VMEM: direct reductions, no accumulators."""
    p = pred_ref[...].astype(jnp.float32)
    t = tgt_ref[...].astype(jnp.float32)
    inter = jnp.sum(p * t, axis=1, keepdims=True)
    if loss_type == "sqrt":
        union = jnp.sum(p * p + t * t, axis=1, keepdims=True) + eps
    else:  # "norm"
        union = jnp.sum(p + t, axis=1, keepdims=True) + eps
    # 'sqrt' and 'norm' share the same final expression (only `union` differs).
    loss_ref[...] = ((1.0 - 2.0 * inter / union) * scale).astype(loss_ref.dtype)


def _dice_tiled_kernel(pred_ref, tgt_ref, loss_ref, inter_acc, union_acc,
                       *, loss_type, eps, scale, tail):
    """Per-row dice loss; D reduction tiled over grid axis 1 (last).

    inter_acc / union_acc are (tn, 128) lane-partial f32 accumulators.
    `tail` is the number of valid lanes of the last D tile, or None when the
    tile width divides D (no masking anywhere).
    """
    k = pl.program_id(1)
    last = pl.num_programs(1) - 1

    @pl.when(k == 0)
    def _():
        inter_acc[...] = jnp.zeros_like(inter_acc)
        union_acc[...] = jnp.zeros_like(union_acc)

    def accumulate(masked):
        p = pred_ref[...].astype(jnp.float32)
        t = tgt_ref[...].astype(jnp.float32)
        if masked:
            # Only the last D tile extends past the array; zero invalid lanes.
            lane = jax.lax.broadcasted_iota(jnp.int32, p.shape, 1)
            valid = lane < tail
            p = jnp.where(valid, p, 0.0)
            t = jnp.where(valid, t, 0.0)
        inter_acc[...] += _lane_partial_sum(p * t)
        if loss_type == "sqrt":
            union_acc[...] += _lane_partial_sum(p * p + t * t)
        else:  # "norm"
            union_acc[...] += _lane_partial_sum(p + t)

    def finalize():
        inter = jnp.sum(inter_acc[...], axis=1, keepdims=True)
        union = jnp.sum(union_acc[...], axis=1, keepdims=True) + eps
        loss_ref[...] = ((1.0 - 2.0 * inter / union) * scale).astype(loss_ref.dtype)

    if tail is not None:
        # Pay the mask only on the final reduction step.
        @pl.when(k < last)
        def _():
            accumulate(False)

        @pl.when(k == last)
        def _():
            accumulate(True)
            finalize()
    else:
        accumulate(False)

        @pl.when(k == last)
        def _():
            finalize()


def _tile_in_spec(tn, tk, nbuf):
    """Input BlockSpec; requests nbuf-deep pipelining when supported."""
    index_map = lambda i, k: (i, k)
    buffered = getattr(pl, "Buffered", None)
    if nbuf > 2 and buffered is not None:
        try:
            return pl.BlockSpec((tn, tk), index_map, pipeline_mode=buffered(nbuf))
        except TypeError:
            pass  # older Pallas without pipeline_mode: default double-buffer
    return pl.BlockSpec((tn, tk), index_map)


def dice_loss(pred, target, *, loss_weight=1.0, reduction="none",
              loss_type="sqrt", eps=1e-5, avg_factor=1.0,
              tn=None, tk=None, single_block=None):
    assert reduction in (None, "none", "mean", "sum")
    assert loss_type in ("norm", "sqrt")
    assert pred.shape[0] == target.shape[0], f"expect {pred.shape} == {target.shape}"

    n = pred.shape[0]
    if n == 0:
        return jnp.sum(pred) * 0.0

    # Keep native (e.g. bf16) dtype: a memory-bound kernel must not read an
    # up-cast HBM copy.  Only non-float inputs (bool/int masks) are cast.
    def as_float(x):
        return x if jnp.issubdtype(x.dtype, jnp.floating) else x.astype(jnp.float32)

    p = as_float(pred).reshape(n, -1)
    t = as_float(target).reshape(n, -1)
    d = p.shape[1]
    pb = p.dtype.itemsize
    tb = t.dtype.itemsize

    # Generation-aware VMEM sizing: ~96/48 MiB on 128 MiB parts (v5e/v6e),
    # 48/24 MiB on v7x (64 MiB VMEM).
    vmem_cap = _vmem_capacity_bytes()
    vmem_limit = vmem_cap * 3 // 4
    budget = vmem_cap * 3 // 8

    scale = float(loss_weight) / float(avg_factor)
    cost = pl.CostEstimate(flops=4 * n * d, transcendentals=0,
                           bytes_accessed=n * d * (pb + tb) + n * 4)

    if single_block is None:
        # Gridless path: no pipeline double-buffering, so residency is just the
        # native inputs + f32 working copies/temporaries (~12 B/elem extra).
        single_block = n * d * (pb + tb + 12) <= budget

    if single_block:
        kernel = functools.partial(_dice_single_kernel, loss_type=loss_type,
                                   eps=float(eps), scale=scale)
        loss = pl.pallas_call(
            kernel,
            out_shape=jax.ShapeDtypeStruct((n, 1), jnp.float32),
            in_specs=[pl.BlockSpec(memory_space=pltpu.MemorySpace.VMEM),
                      pl.BlockSpec(memory_space=pltpu.MemorySpace.VMEM)],
            out_specs=pl.BlockSpec(memory_space=pltpu.MemorySpace.VMEM),
            compiler_params=pltpu.CompilerParams(vmem_limit_bytes=vmem_limit),
            cost_estimate=cost,
        )(p, t)
    else:
        # Row blocking: multiple of 8 (or full N).  Guarantee >= 2 row blocks
        # when N > 8 so the leading 'parallel' axis can shard across v7x's two
        # TensorCores (harmless on single-TC v5e/v6e).
        if tn is None:
            tn = n if n <= 8 else min(256, _round_up((n + 1) // 2, 8))
        elif tn != n and tn % 8 != 0:
            tn = _round_up(max(tn, 1), 8)
        if tn != n:
            tn = min(max(tn, 8), _round_up(n, 8))

        # Lane tiling: biggest multiple of 128 that keeps the working set
        # (up to 3 pipeline buffers per input + f32 temporaries) in budget.
        nbuf = 3
        if tk is None:
            per_lane_col = tn * (nbuf * (pb + tb) + 8)
            tk = (budget // per_lane_col) // 128 * 128
            tk = max(128, min(tk, 8192))
        else:
            tk = max(128, _round_up(tk, 128))
        tk = min(tk, _round_up(d, 128))

        n_row_blocks = pl.cdiv(n, tn)
        n_d_blocks = pl.cdiv(d, tk)
        tail = None if d % tk == 0 else d - (n_d_blocks - 1) * tk
        in_nbuf = nbuf if n_d_blocks >= 3 else 2

        kernel = functools.partial(_dice_tiled_kernel, loss_type=loss_type,
                                   eps=float(eps), scale=scale, tail=tail)
        loss = pl.pallas_call(
            kernel,
            out_shape=jax.ShapeDtypeStruct((n, 1), jnp.float32),
            grid_spec=pltpu.PrefetchScalarGridSpec(
                num_scalar_prefetch=0,
                grid=(n_row_blocks, n_d_blocks),
                in_specs=[_tile_in_spec(tn, tk, in_nbuf),
                          _tile_in_spec(tn, tk, in_nbuf)],
                out_specs=pl.BlockSpec((tn, 1), lambda i, k: (i, 0)),
                scratch_shapes=[pltpu.VMEM((tn, 128), jnp.float32),
                                pltpu.VMEM((tn, 128), jnp.float32)],
            ),
            compiler_params=pltpu.CompilerParams(
                dimension_semantics=("parallel", "arbitrary"),
                vmem_limit_bytes=vmem_limit),
            cost_estimate=cost,
        )(p, t)

    loss = loss.reshape(n)
    # Glue-level reduction (default in the module is 'none').
    if reduction == "sum":
        loss = jnp.sum(loss)
    elif reduction == "mean":
        loss = jnp.mean(loss)
    return loss


def _dice_loss_ref(pred, target, *, loss_weight=1.0, reduction="none",
                   loss_type="sqrt", eps=1e-5, avg_factor=1.0):
    n = pred.shape[0]
    p = pred.reshape(n, -1).astype(jnp.float32)
    t = target.reshape(n, -1).astype(jnp.float32)
    if loss_type == "sqrt":
        inter = jnp.sum(p * t, axis=1)
        union = jnp.sum(p * p, axis=1) + jnp.sum(t * t, axis=1) + eps
        loss = 1.0 - 2.0 * inter / union
    else:
        inter = 2.0 * jnp.sum(p * t, axis=1)
        union = jnp.sum(p, axis=1) + jnp.sum(t, axis=1) + eps
        loss = 1.0 - inter / union
    if reduction == "sum":
        loss = jnp.sum(loss)
    elif reduction == "mean":
        loss = jnp.mean(loss)
    return loss_weight * loss / avg_factor


if __name__ == "__main__":
    key = jax.random.PRNGKey(0)
    k1, k2, k3, k4, k5, k6 = jax.random.split(key, 6)

    # 1) Small per-sample masks (N, C, H, W) -> gridless single-block path.
    pred = jax.nn.sigmoid(jax.random.normal(k1, (2, 4, 16, 16), jnp.float32))
    target = (jax.random.uniform(k2, (2, 4, 16, 16)) > 0.5).astype(jnp.float32)
    out = jax.block_until_ready(
        dice_loss(pred, target, loss_weight=1.0, reduction="none",
                  loss_type="sqrt", eps=1e-5, avg_factor=1.0))
    ref = _dice_loss_ref(pred, target, loss_weight=1.0, reduction="none",
                         loss_type="sqrt", eps=1e-5, avg_factor=1.0)
    assert out.shape == (2,)
    assert jnp.allclose(out, ref, atol=1e-5, rtol=1e-5), (out, ref)

    # 2) 'norm' variant + mean reduction (single-block path).
    out2 = jax.block_until_ready(
        dice_loss(pred, target, reduction="mean", loss_type="norm"))
    ref2 = _dice_loss_ref(pred, target, reduction="mean", loss_type="norm")
    assert jnp.allclose(out2, ref2, atol=1e-5, rtol=1e-5), (out2, ref2)

    # 3) Tiled path (forced): bf16 inputs, tail row block (n=12, tn=8) and a
    #    masked tail D tile (d=1200, tk=512) -> exercises the last-step mask.
    pred3 = jax.nn.sigmoid(jax.random.normal(k3, (12, 3, 20, 20), jnp.bfloat16))
    target3 = (jax.random.uniform(k4, (12, 3, 20, 20)) > 0.5).astype(jnp.bfloat16)
    out3 = jax.block_until_ready(
        dice_loss(pred3, target3, loss_weight=0.5, reduction="none",
                  loss_type="sqrt", avg_factor=2.0,
                  tn=8, tk=512, single_block=False))
    ref3 = _dice_loss_ref(pred3, target3, loss_weight=0.5, reduction="none",
                          loss_type="sqrt", avg_factor=2.0)
    assert out3.shape == (12,)
    assert jnp.allclose(out3, ref3, atol=1e-5, rtol=1e-4), (out3, ref3)

    # 4) Tiled path with auto tn/tk heuristics (>= 2 row blocks for v7x),
    #    f32 inputs, no tail mask, 'sum' reduction + scaling.
    pred4 = jax.nn.sigmoid(jax.random.normal(k5, (16, 4, 32, 32), jnp.float32))
    target4 = (jax.random.uniform(k6, (16, 4, 32, 32)) > 0.5).astype(jnp.float32)
    out4 = jax.block_until_ready(
        dice_loss(pred4, target4, loss_weight=2.0, reduction="sum",
                  loss_type="sqrt", avg_factor=4.0, single_block=False))
    ref4 = _dice_loss_ref(pred4, target4, loss_weight=2.0, reduction="sum",
                          loss_type="sqrt", avg_factor=4.0)
    assert jnp.allclose(out4, ref4, atol=1e-5, rtol=1e-5), (out4, ref4)

    print("KERNEL_OK")
</pallas_src>

<mosaic_0001>
module attributes {stable_mosaic.version = 11 : i64} {
  func.func @_dice_single_kernel(%arg0: memref<2x1024xf32, #tpu.memory_space<vmem>>, %arg1: memref<2x1024xf32, #tpu.memory_space<vmem>>, %arg2: memref<2x1xf32, #tpu.memory_space<vmem>>) attributes {dimension_semantics = [], scalar_prefetch = 0 : i64, scratch_operands = 0 : i64, tpu.core_type = #tpu.core_type<tc>} {
    %c0 = arith.constant 0 : index
    %c0_0 = arith.constant 0 : index
    %0 = vector.load %arg0[%c0, %c0_0] : memref<2x1024xf32, #tpu.memory_space<vmem>>, vector<2x1024xf32>
    %c0_1 = arith.constant 0 : index
    %c0_2 = arith.constant 0 : index
    %1 = vector.load %arg1[%c0_1, %c0_2] : memref<2x1024xf32, #tpu.memory_space<vmem>>, vector<2x1024xf32>
    %2 = arith.mulf %0, %1 : vector<2x1024xf32>
    %cst = arith.constant dense<0.000000e+00> : vector<2xf32>
    %3 = vector.multi_reduction <add>, %2, %cst [1] : vector<2x1024xf32> to vector<2xf32>
    %4 = vector.shape_cast %3 : vector<2xf32> to vector<2x1xf32>
    %5 = arith.mulf %0, %0 : vector<2x1024xf32>
    %6 = arith.mulf %1, %1 : vector<2x1024xf32>
    %7 = arith.addf %5, %6 : vector<2x1024xf32>
    %cst_3 = arith.constant dense<0.000000e+00> : vector<2xf32>
    %8 = vector.multi_reduction <add>, %7, %cst_3 [1] : vector<2x1024xf32> to vector<2xf32>
    %9 = vector.shape_cast %8 : vector<2xf32> to vector<2x1xf32>
    %cst_4 = arith.constant 9.99999974E-6 : f32
    %10 = vector.broadcast %cst_4 : f32 to vector<2x1xf32>
    %11 = arith.addf %9, %10 : vector<2x1xf32>
    %cst_5 = arith.constant 2.000000e+00 : f32
    %12 = vector.broadcast %cst_5 : f32 to vector<2x1xf32>
    %13 = arith.mulf %12, %4 : vector<2x1xf32>
    %14 = arith.divf %13, %11 : vector<2x1xf32>
    %cst_6 = arith.constant 1.000000e+00 : f32
    %15 = vector.broadcast %cst_6 : f32 to vector<2x1xf32>
    %16 = arith.subf %15, %14 : vector<2x1xf32>
    %cst_7 = arith.constant 1.000000e+00 : f32
    %17 = vector.broadcast %cst_7 : f32 to vector<2x1xf32>
    %18 = arith.mulf %16, %17 : vector<2x1xf32>
    %c0_8 = arith.constant 0 : index
    %c0_9 = arith.constant 0 : index
    %19 = vector.load %arg2[%c0_8, %c0_9] : memref<2x1xf32, #tpu.memory_space<vmem>>, vector<2x1xf32>
    tpu.vector_store %arg2[%c0_8, %c0_9], %18 {strides = array<i32>} : memref<2x1xf32, #tpu.memory_space<vmem>>, vector<2x1xf32>,
    return
  }
}

</mosaic_0001>

<bundles_post_ra>
// kernel: tpu_custom_call.1
= control target key start
LH: loop header
LB: loop body
LE: loop exit
PB: predicated region body
PF: predicated region fallthrough
CT: control target
= control target key end

     0   :  { %7 = vsyncpa [#allocation3], 0  ;;  %s297_s0 = inlined_call_operand.hbm [shape: f32[2,1024], index: 0, kind: input, shape index: {}]   ;;  %s298_s1 = inlined_call_operand.hbm [shape: f32[2,1024], index: 1, kind: input, shape index: {}]   ;;  %s299_s2 = inlined_call_operand.vmem [shape: f32[2,1], index: 2, kind: output, shape index: {}]  }
   0x1   :  { %8 = vsyncpa [#allocation5], 0  ;;  %s236_s9 = smov [#allocation2]   ;;  %s237_s11 = smov [#allocation4]  }
   0x2   :  { %s15_s10 = sshll.u32 %s236_s9, 4  ;;  %s25_s12 = sshll.u32 %s237_s11, 4  ;;  %s16_s10 = int_to_ptr.vmem [resolvable:$true] %s15_s10  ;;  %s26_s12 = int_to_ptr.vmem [resolvable:$true] %s25_s12 }
   0x3   :  { %s188_s15 = scalar_lea.hbm %s297_s0, 256 }
   0x4   :  { %p189_p0 = scmp.ne.s32.totalorder %s297_s0, %s188_s15  ;;  %p192_p1 = scmp.lt.u32.totalorder %s188_s15, %s297_s0 }
   0x6   :  { %p194_p2 = pnand %p192_p1, %p189_p0 }
   0x8   :  { %197 = shalt.err (!%p194_p2)
}
   0x9   :  { %s198_s20 = scalar_lea.vmem %s16_s10, 256  ;;  %p203_p4 = scmp.lt.s32.totalorder %s16_s10, %s16_s10 }
   0xa   :  { %p199_p3 = scmp.ne.s32.totalorder %s16_s10, %s198_s20  ;;  %p204_p5 = scmp.lt.s32.totalorder %s198_s20, %s198_s20 }
   0xc   :  { %p205_p6 = por %p204_p5, %p203_p4 }
   0xe   :  { %p206_p7 = pnand %p205_p6, %p199_p3 }
  0x10   :  { %209 = shalt.err (!%p206_p7)
}
  0x11   :  { %18 = dma.hbm_to_vmem [thread:$0]  %s297_s0, 256, %s16_s10, [#allocation3]  }
  0x12   :  { %s210_s25 = scalar_lea.hbm %s298_s1, 256 }
  0x13   :  { %p211_p8 = scmp.ne.s32.totalorder %s298_s1, %s210_s25  ;;  %p214_p9 = scmp.lt.u32.totalorder %s210_s25, %s298_s1 }
  0x15   :  { %p216_p10 = pnand %p214_p9, %p211_p8 }
  0x17   :  { %219 = shalt.err (!%p216_p10)
}
  0x18   :  { %s220_s30 = scalar_lea.vmem %s26_s12, 256  ;;  %p225_p12 = scmp.lt.s32.totalorder %s26_s12, %s26_s12 }
  0x19   :  { %p221_p11 = scmp.ne.s32.totalorder %s26_s12, %s220_s30  ;;  %p226_p13 = scmp.lt.s32.totalorder %s220_s30, %s220_s30 }
  0x1b   :  { %p227_p0 = por %p226_p13, %p225_p12 }
  0x1d   :  { %p228_p1 = pnand %p227_p0, %p221_p11 }
  0x1f   :  { %231 = shalt.err (!%p228_p1)
}
  0x20   :  { %28 = dma.hbm_to_vmem [thread:$0]  %s298_s1, 256, %s26_s12, [#allocation5]  }
  0x21   :  { %232 = dma.done.wait [#allocation3], 256  }
  0x22   :  { %233 = vsyncadd [#allocation3], 4294967040 }
  0x23   :  { %234 = dma.done.wait [#allocation5], 256  }
  0x24   :  { %235 = vsyncadd [#allocation5], 4294967040  ;;  %v47_v0 = vlaneseq  ;;  %v238_v1 = vmov 1983009808   ;;  %v35_v5 = vld [vmem:[#allocation2] sm:$0xff]  ;;  %v36_v6 = vld [vmem:[#allocation2 + $0x8] sm:$0xff] }
  0x25   :  { %v45_v2 = vunpack.c.l.s4 %v238_v1  ;;  %v37_v7 = vld [vmem:[#allocation4] sm:$0xff]  ;;  %v38_v9 = vld [vmem:[#allocation4 + $0x8] sm:$0xff]  ;;  %v103_v10 = vmul.f32 %v35_v5, %v35_v5  ;;  %v104_v11 = vmul.f32 %v36_v6, %v36_v6  ;;  %vm85_vm0 = vcmask 1041408  }
  0x26   :  { %v48_v4 = vshrl.u32 %v47_v0, 7  ;;  %v105_v12 = vmul.f32 %v37_v7, %v37_v7  ;;  %v39_v13 = vmul.f32 %v37_v7, %v35_v5  ;;  %v106_v14 = vmul.f32 %v38_v9, %v38_v9 }
  0x27   :  { %v46_v3 = vunpack.c.0.s8 %v45_v2  ;;  %v40_v19 = vmul.f32 %v38_v9, %v36_v6  ;;  %vm175_vm1 = vcmask 1024  }
  0x28   :  { %v107_v15 = vadd.f32 %v105_v12, %v103_v10  ;;  %v43_v16 = vcombine.high %v39_v13, %v39_v13  ;;  %v108_v18 = vadd.f32 %v106_v14, %v104_v11 }
  0x29   :  { %v49_v8 = vsub.s32 %v46_v3, %v48_v4  ;;  %v60_v30 = vcombine.high %v40_v19, %v40_v19 }
  0x2a   :  { %v111_v20 = vcombine.high %v107_v15, %v107_v15  ;;  %v128_v23 = vcombine.high %v108_v18, %v108_v18 }
  0x2b   :  { %v50_v17 = vrot.slane %v39_v13, %v49_v8  ;;  %v118_v21 = vrot.slane %v107_v15, %v49_v8  ;;  %v57_v22 = vrot.slane %v43_v16, %v49_v8  ;;  %v135_v27 = vrot.slane %v108_v18, %v49_v8 }
  0x2c   :  { %v125_v25 = vrot.slane %v111_v20, %v49_v8  ;;  %v67_v31 = vrot.slane %v40_v19, %v49_v8  ;;  %v142_v36 = vrot.slane %v128_v23, %v49_v8  ;;  %v74_v45 = vrot.slane %v60_v30, %v49_v8 }
  0x2d   :  { %v58_v24 = vcombine.high %v50_v17, %v50_v17  ;;  %v126_v26 = vcombine.high %v118_v21, %v118_v21  ;;  %v153_v28 = vsel %vm85_vm0, %v118_v21, 0.0  ;;  %v59_v29 = vcombine.high %v57_v22, %v57_v22 }
  0x2e   :  { %v127_v32 = vcombine.high %v125_v25, %v125_v25  ;;  %v156_v34 = vsel %vm85_vm0, %v125_v25, 0.0  ;;  %v86_v35 = vsel %vm85_vm0, %v50_v17, 0.0  ;;  %v143_v38 = vcombine.high %v135_v27, %v135_v27 }
  0x2f   :  { %v154_v33 = vsel %vm85_vm0, %v126_v26, 0.0  ;;  %v87_v40 = vsel %vm85_vm0, %v58_v24, 0.0  ;;  %v89_v41 = vsel %vm85_vm0, %v57_v22, 0.0  ;;  %v160_v44 = vsel %vm85_vm0, %v135_v27, 0.0 }
  0x30   :  { %v155_v37 = vadd.f32 %v154_v33, %v153_v28  ;;  %v158_v39 = vsel %vm85_vm0, %v127_v32, 0.0  ;;  %v88_v43 = vadd.f32 %v87_v40, %v86_v35  ;;  %v75_v46 = vcombine.high %v67_v31, %v67_v31 }
  0x31   :  { %v91_v47 = vsel %vm85_vm0, %v59_v29, 0.0  ;;  %v144_v50 = vcombine.high %v142_v36, %v142_v36  ;;  %v162_v51 = vsel %vm85_vm0, %v143_v38, 0.0  ;;  %v93_v52 = vsel %vm85_vm0, %v67_v31, 0.0 }
  0x32   :  { %v157_v42 = vadd.f32 %v156_v34, %v155_v37  ;;  %v90_v49 = vadd.f32 %v89_v41, %v88_v43  ;;  %v164_v55 = vsel %vm85_vm0, %v142_v36, 0.0  ;;  %v76_v56 = vcombine.high %v74_v45, %v74_v45 }
  0x33   :  { %v95_v57 = vsel %vm85_vm0, %v75_v46, 0.0  ;;  %v166_v60 = vsel %vm85_vm0, %v144_v50, 0.0  ;;  %v97_v61 = vsel %vm85_vm0, %v74_v45, 0.0 }
  0x34   :  { %v159_v48 = vadd.f32 %v158_v39, %v157_v42  ;;  %v92_v54 = vadd.f32 %v91_v47, %v90_v49  ;;  %v99_v0 = vsel %vm85_vm0, %v76_v56, 0.0 }
  0x36   :  { %v161_v53 = vadd.f32 %v160_v44, %v159_v48  ;;  %v94_v59 = vadd.f32 %v93_v52, %v92_v54 }
  0x38   :  { %v163_v58 = vadd.f32 %v162_v51, %v161_v53  ;;  %v96_v63 = vadd.f32 %v95_v57, %v94_v59 }
  0x3a   :  { %v165_v62 = vadd.f32 %v164_v55, %v163_v58  ;;  %v98_v2 = vadd.f32 %v97_v61, %v96_v63 }
  0x3c   :  { %v167_v1 = vadd.f32 %v166_v60, %v165_v62  ;;  %v100_v3 = vadd.f32 %v99_v0, %v98_v2 }
  0x3e   :  { %168 = vadd.xlane.f32.xlu0 %v167_v1 }
  0x42   :  { %101 = vadd.xlane.f32.xlu0 %v100_v3 }
  0xcb   :  { %v169_v4 = vpop.xlane.xlu0 %168 }
  0xcc   :  { %v170_v5 = vadd.f32 1e-05, %v169_v4 }
  0xce   :  { %186 = vrcp.f32 %v170_v5 }
  0xcf   :  { %v102_v6 = vpop.xlane.xlu0 %101 }
  0xd0   :  { %v171_v7 = vmul.f32 2.0, %v102_v6 }
  0xd8   :  { %v187_v8 = vpop.eup %186 }
  0xd9   :  { %v173_v9 = vmul.f32 %v187_v8, %v171_v7 }
  0xdb   :  { %v174_v10 = vsub.f32 1.0, %v173_v9 }
  0xdd   :  { %176 = vst.msk [vmem:[%s299_s2] sm:$0x3] %vm175_vm1, %v174_v10 }
  0xde   :  { %181 = vsyncpa [#allocation3], 1 }
  0xdf   :  { %182 = vsyncpa [#allocation5], 1 }

</bundles_post_ra>
